<compile_context>
chip_gen: v6e
topology: v6e:2x2x1
jax: 0.10.0
libtpu: 0.0.40
codegen_flags: <defaults>
</compile_context>

<pallas_src>
import jax
import jax.numpy as jnp
from jax import lax
from jax.experimental import pallas as pl
from jax.experimental.pallas import tpu as pltpu

_LANE_CANDIDATES = (512, 384, 256, 128)  # lane-dense last dims (multiples of 128)
_TILE_BYTES = 2 * 1024 * 1024            # per input, per pipeline buffer
_NCORES = 2                              # leading "parallel" grid axis (v7x megacore)
_VMEM_LIMIT = 48 * 1024 * 1024           # headroom over the 16 MiB v5e scoped default


def centernet_focal_loss(pred, gt):
    """pred, gt: same-shape arrays (e.g. (B, C, H, W); f32 or bf16) -> scalar f32."""
    assert pred.shape == gt.shape
    total = int(pred.size)

    itemsizes = (jnp.dtype(pred.dtype).itemsize, jnp.dtype(gt.dtype).itemsize)
    min_item = max(1, min(itemsizes))
    max_item = max(itemsizes)
    sublane_mult = 8 * max(1, 4 // min_item)     # 8 f32, 16 bf16, 32 int8/fp8

    # ---- pick a lane width that divides the element count (copy-free reshape) ----
    lanes = None
    for cand in _LANE_CANDIDATES:                # prefer a width whose row count
        if total % cand == 0 and (total // cand) % sublane_mult == 0:
            lanes = cand                         # also tiles cleanly in sublanes
            break
    if lanes is None:
        for cand in _LANE_CANDIDATES:
            if total % cand == 0:
                lanes = cand
                break

    pred_flat = pred.reshape(-1)
    gt_flat = gt.reshape(-1)
    if lanes is None:
        # Rare fallback: element count is not a multiple of 128.  Pad the flat
        # arrays up to one lane row.  pred=0.5 / gt=2.0 contribute exactly zero
        # loss and zero num_pos and keep the fused log finite.
        lanes = 128
        padded_total = ((total + lanes - 1) // lanes) * lanes
        pad = padded_total - total
        pred_flat = jnp.pad(pred_flat, (0, pad),
                            constant_values=jnp.asarray(0.5, pred_flat.dtype))
        gt_flat = jnp.pad(gt_flat, (0, pad),
                          constant_values=jnp.asarray(2.0, gt_flat.dtype))
        total = padded_total

    rows = total // lanes

    # ---- tile sizing ------------------------------------------------------------
    cap_rows = max(sublane_mult,
                   (_TILE_BYTES // (lanes * max_item)) // sublane_mult * sublane_mult)
    rows_rounded = ((rows + sublane_mult - 1) // sublane_mult) * sublane_mult
    tile_rows = min(cap_rows, rows_rounded)

    n_blocks = (rows + tile_rows - 1) // tile_rows      # blocks that touch data
    ncores = max(1, min(_NCORES, n_blocks))             # don't split fewer blocks than cores
    bpc = (n_blocks + ncores - 1) // ncores              # blocks per core
    full_blocks = rows // tile_rows                      # blocks with no row tail
    has_oob_blocks = ncores * bpc > n_blocks              # grid larger than needed blocks
    need_mask = has_oob_blocks or (rows % tile_rows != 0)
    max_block = n_blocks - 1

    pred2 = pred_flat.reshape(rows, lanes)               # free (contiguous) reshape
    gt2 = gt_flat.reshape(rows, lanes)

    if has_oob_blocks:
        # Clamp so no DMA starts past the array; the clamped (re-read) block is
        # fully zeroed by the in-kernel row mask.
        def in_map(i, j):
            return (jnp.minimum(i * bpc + j, max_block), 0)
    else:
        def in_map(i, j):
            return (i * bpc + j, 0)

    def kernel(pred_ref, gt_ref, out_ref):
        i = pl.program_id(0)
        j = pl.program_id(1)

        @pl.when(j == 0)
        def _init():
            out_ref[...] = jnp.zeros_like(out_ref)

        p = pred_ref[...].astype(jnp.float32)
        g = gt_ref[...].astype(jnp.float32)

        def accumulate(valid):
            pos_mask = g == 1.0
            omp = 1.0 - p
            # Disjoint pos/neg branches share a single EUP log.
            log_val = jnp.log(jnp.where(pos_mask, p, omp))
            pos_term = log_val * omp * omp
            # max(1-gt, 0) zeroes the neg branch for gt >= 1, matching the
            # reference's (gt < 1) mask without an extra compare + select.
            negw = jnp.maximum(1.0 - g, 0.0)
            negw2 = negw * negw
            neg_term = log_val * (p * p) * (negw2 * negw2)
            elem = jnp.where(pos_mask, pos_term, neg_term)
            cnt = pos_mask
            if valid is not None:                 # only emitted for tail blocks
                elem = jnp.where(valid, elem, 0.0)
                cnt = jnp.logical_and(valid, pos_mask)
            cnt = cnt.astype(jnp.float32)
            r, l = elem.shape
            # Fold rows into an (8, lanes) slab: pure VPU adds, no XLU.
            out_ref[0, 0] += jnp.sum(elem.reshape(r // 8, 8, l), axis=0)
            out_ref[0, 1] += jnp.sum(cnt.reshape(r // 8, 8, l), axis=0)

        if need_mask:                             # Python-static: baked at trace
            gblock = i * bpc + j

            @pl.when(gblock < full_blocks)
            def _full():
                accumulate(None)

            @pl.when(gblock >= full_blocks)
            def _tail():
                row0 = gblock * tile_rows
                ridx = lax.broadcasted_iota(jnp.int32, (tile_rows, lanes), 0)
                accumulate((row0 + ridx) < rows)
        else:
            accumulate(None)

    partials = pl.pallas_call(
        kernel,
        out_shape=jax.ShapeDtypeStruct((ncores, 2, 8, lanes), jnp.float32),
        grid_spec=pltpu.PrefetchScalarGridSpec(
            num_scalar_prefetch=0,
            grid=(ncores, bpc),
            in_specs=[
                pl.BlockSpec((tile_rows, lanes), in_map),
                pl.BlockSpec((tile_rows, lanes), in_map),
            ],
            out_specs=pl.BlockSpec((1, 2, 8, lanes), lambda i, j: (i, 0, 0, 0)),
        ),
        compiler_params=pltpu.CompilerParams(
            dimension_semantics=("parallel", "arbitrary"),
            vmem_limit_bytes=_VMEM_LIMIT),
    )(pred2, gt2)

    # Tiny final cross-lane / cross-core reduce + the num_pos == 0 branch in JAX.
    loss_sum = jnp.sum(partials[:, 0])   # pos_loss + neg_loss
    num_pos = jnp.sum(partials[:, 1])
    # When num_pos == 0, loss_sum == neg_loss_sum (pos terms are masked to 0),
    # so -loss_sum matches the PyTorch `loss - neg_loss` branch exactly.
    return jnp.where(num_pos == 0.0, -loss_sum,
                     -loss_sum / jnp.maximum(num_pos, 1.0))


class CenterNetFocalLoss:
    """Functional stand-in for the PyTorch nn.Module wrapper."""

    def __call__(self, out, target):
        return centernet_focal_loss(out, target)


def _reference_loss(pred, gt):
    pred = pred.astype(jnp.float32)
    gt = gt.astype(jnp.float32)
    pos_inds = (gt == 1.0).astype(jnp.float32)
    neg_inds = (gt < 1.0).astype(jnp.float32)
    neg_weights = (1.0 - gt) ** 4
    pos_loss = jnp.log(pred) * (1.0 - pred) ** 2 * pos_inds
    neg_loss = jnp.log(1.0 - pred) * pred ** 2 * neg_weights * neg_inds
    num_pos = pos_inds.sum()
    pos_s = pos_loss.sum()
    neg_s = neg_loss.sum()
    return jnp.where(num_pos == 0.0, -neg_s,
                     -(pos_s + neg_s) / jnp.maximum(num_pos, 1.0))


if __name__ == "__main__":
    key = jax.random.PRNGKey(0)
    k1, k2, k3 = jax.random.split(key, 3)

    B, C, H, W = 2, 4, 16, 16

    # pred: sigmoid-like heatmap scores strictly in (0, 1)
    pred = jax.nn.sigmoid(jax.random.normal(k1, (B, C, H, W), jnp.float32) * 2.0)

    # gt: gaussian-style target heatmap in [0, 1] with some exact 1.0 peaks
    gt = jax.random.uniform(k2, (B, C, H, W), jnp.float32)
    peaks = jax.random.uniform(k3, (B, C, H, W)) > 0.98
    gt = jnp.where(peaks, 1.0, gt * 0.95)

    # 1) main path
    loss = centernet_focal_loss(pred, gt)
    jax.block_until_ready(loss)
    ref = _reference_loss(pred, gt)
    assert jnp.allclose(loss, ref, rtol=1e-5, atol=1e-5), (loss, ref)

    # 2) num_pos == 0 branch
    gt0 = gt * 0.9
    loss0 = centernet_focal_loss(pred, gt0)
    jax.block_until_ready(loss0)
    assert jnp.allclose(loss0, _reference_loss(pred, gt0), rtol=1e-5, atol=1e-5)

    # 3) bf16 streaming path (inputs stay bf16 in HBM; kernel upcasts in-register)
    pred_bf = jnp.clip(pred, 1e-3, 1.0 - 4e-3).astype(jnp.bfloat16)
    gt_bf = gt.astype(jnp.bfloat16)
    loss_bf = centernet_focal_loss(pred_bf, gt_bf)
    jax.block_until_ready(loss_bf)
    assert jnp.allclose(loss_bf, _reference_loss(pred_bf, gt_bf),
                        rtol=1e-4, atol=1e-4)

    # 4) shape whose row count does not tile evenly -> in-kernel tail masking
    k4, k5, k6 = jax.random.split(jax.random.PRNGKey(1), 3)
    pred2 = jax.nn.sigmoid(jax.random.normal(k4, (2, 3, 24, 16), jnp.float32))
    gt2 = jax.random.uniform(k5, (2, 3, 24, 16), jnp.float32) * 0.95
    gt2 = jnp.where(jax.random.uniform(k6, gt2.shape) > 0.97, 1.0, gt2)
    loss2 = centernet_focal_loss(pred2, gt2)
    jax.block_until_ready(loss2)
    assert jnp.allclose(loss2, _reference_loss(pred2, gt2), rtol=1e-5, atol=1e-5)

    # 5) element count not a multiple of 128 -> rare small-pad fallback path
    k7, k8 = jax.random.split(jax.random.PRNGKey(2), 2)
    pred3 = jax.nn.sigmoid(jax.random.normal(k7, (1, 1, 5, 5), jnp.float32))
    gt3 = jax.random.uniform(k8, (1, 1, 5, 5), jnp.float32) * 0.9
    gt3 = gt3.at[0, 0, 2, 2].set(1.0)
    loss3 = centernet_focal_loss(pred3, gt3)
    jax.block_until_ready(loss3)
    assert jnp.allclose(loss3, _reference_loss(pred3, gt3), rtol=1e-5, atol=1e-5)

    print("KERNEL_OK")
</pallas_src>

<mosaic_0001>
module attributes {stable_mosaic.version = 11 : i64} {
  func.func @kernel(%arg0: i32, %arg1: i32, %arg2: memref<8x256xf32, #tpu.memory_space<vmem>>, %arg3: memref<8x256xf32, #tpu.memory_space<vmem>>, %arg4: memref<1x2x8x256xf32, #tpu.memory_space<vmem>>) attributes {dimension_semantics = [#tpu.dimension_semantics<parallel>, #tpu.dimension_semantics<arbitrary>], iteration_bounds = array<i64: 1, 1>, scalar_prefetch = 0 : i64, scratch_operands = 0 : i64, tpu.core_type = #tpu.core_type<tc>, window_params = [{transform_indices = @transform_0, window_bounds = array<i64: 8, 256>}, {transform_indices = @transform_1, window_bounds = array<i64: 8, 256>}, {transform_indices = @transform_2, window_bounds = array<i64: 1, 2, 8, 256>}]} {
    %c0_i32 = arith.constant 0 : i32
    %0 = arith.cmpi eq, %arg1, %c0_i32 : i32
    %1 = arith.extui %0 : i1 to i32
    %c0_i32_0 = arith.constant 0 : i32
    %2 = arith.cmpi ne, %1, %c0_i32_0 : i32
    scf.if %2 {
      %cst_24 = arith.constant 0.000000e+00 : f32
      %41 = vector.broadcast %cst_24 : f32 to vector<1x2x8x256xf32>
      %c0_25 = arith.constant 0 : index
      %c0_26 = arith.constant 0 : index
      %c0_27 = arith.constant 0 : index
      %c0_28 = arith.constant 0 : index
      %42 = vector.load %arg4[%c0_25, %c0_26, %c0_27, %c0_28] : memref<1x2x8x256xf32, #tpu.memory_space<vmem>>, vector<1x2x8x256xf32>
      tpu.vector_store %arg4[%c0_25, %c0_26, %c0_27, %c0_28], %41 {strides = array<i32>} : memref<1x2x8x256xf32, #tpu.memory_space<vmem>>, vector<1x2x8x256xf32>,
    } else {
    }
    %c0 = arith.constant 0 : index
    %c0_1 = arith.constant 0 : index
    %3 = vector.load %arg2[%c0, %c0_1] : memref<8x256xf32, #tpu.memory_space<vmem>>, vector<8x256xf32>
    %c0_2 = arith.constant 0 : index
    %c0_3 = arith.constant 0 : index
    %4 = vector.load %arg3[%c0_2, %c0_3] : memref<8x256xf32, #tpu.memory_space<vmem>>, vector<8x256xf32>
    %cst = arith.constant 1.000000e+00 : f32
    %5 = vector.broadcast %cst : f32 to vector<8x256xf32>
    %6 = arith.cmpf oeq, %4, %5 : vector<8x256xf32>
    %cst_4 = arith.constant 1.000000e+00 : f32
    %7 = vector.broadcast %cst_4 : f32 to vector<8x256xf32>
    %8 = arith.subf %7, %3 : vector<8x256xf32>
    %9 = arith.select %6, %3, %8 : vector<8x256xi1>, vector<8x256xf32>
    %10 = math.log %9 : vector<8x256xf32>
    %11 = arith.mulf %10, %8 : vector<8x256xf32>
    %12 = arith.mulf %11, %8 : vector<8x256xf32>
    %cst_5 = arith.constant 1.000000e+00 : f32
    %13 = vector.broadcast %cst_5 : f32 to vector<8x256xf32>
    %14 = arith.subf %13, %4 : vector<8x256xf32>
    %cst_6 = arith.constant 0.000000e+00 : f32
    %15 = vector.broadcast %cst_6 : f32 to vector<8x256xf32>
    %16 = arith.maximumf %14, %15 : vector<8x256xf32>
    %17 = arith.mulf %16, %16 : vector<8x256xf32>
    %18 = arith.mulf %3, %3 : vector<8x256xf32>
    %19 = arith.mulf %10, %18 : vector<8x256xf32>
    %20 = arith.mulf %17, %17 : vector<8x256xf32>
    %21 = arith.mulf %19, %20 : vector<8x256xf32>
    %22 = arith.select %6, %12, %21 : vector<8x256xi1>, vector<8x256xf32>
    %23 = arith.extui %6 : vector<8x256xi1> to vector<8x256xi32>
    %24 = arith.sitofp %23 : vector<8x256xi32> to vector<8x256xf32>
    %c0_7 = arith.constant 0 : index
    %c0_8 = arith.constant 0 : index
    %c0_9 = arith.constant 0 : index
    %c0_10 = arith.constant 0 : index
    %25 = vector.load %arg4[%c0_7, %c0_8, %c0_9, %c0_10] : memref<1x2x8x256xf32, #tpu.memory_space<vmem>>, vector<1x1x8x256xf32>
    %26 = vector.shape_cast %25 : vector<1x1x8x256xf32> to vector<8x256xf32>
    %27 = vector.shape_cast %22 : vector<8x256xf32> to vector<1x8x256xf32>
    %cst_11 = arith.constant dense<0.000000e+00> : vector<8x256xf32>
    %28 = vector.multi_reduction <add>, %27, %cst_11 [0] : vector<1x8x256xf32> to vector<8x256xf32>
    %29 = arith.addf %26, %28 : vector<8x256xf32>
    %c0_12 = arith.constant 0 : index
    %c0_13 = arith.constant 0 : index
    %c0_14 = arith.constant 0 : index
    %c0_15 = arith.constant 0 : index
    %30 = vector.load %arg4[%c0_12, %c0_13, %c0_14, %c0_15] : memref<1x2x8x256xf32, #tpu.memory_space<vmem>>, vector<1x1x8x256xf32>
    %31 = vector.shape_cast %30 : vector<1x1x8x256xf32> to vector<8x256xf32>
    %32 = vector.shape_cast %29 : vector<8x256xf32> to vector<1x1x8x256xf32>
    tpu.vector_store %arg4[%c0_12, %c0_13, %c0_14, %c0_15], %32 {strides = array<i32>} : memref<1x2x8x256xf32, #tpu.memory_space<vmem>>, vector<1x1x8x256xf32>,
    %c0_16 = arith.constant 0 : index
    %c1 = arith.constant 1 : index
    %c0_17 = arith.constant 0 : index
    %c0_18 = arith.constant 0 : index
    %33 = vector.load %arg4[%c0_16, %c1, %c0_17, %c0_18] : memref<1x2x8x256xf32, #tpu.memory_space<vmem>>, vector<1x1x8x256xf32>
    %34 = vector.shape_cast %33 : vector<1x1x8x256xf32> to vector<8x256xf32>
    %35 = vector.shape_cast %24 : vector<8x256xf32> to vector<1x8x256xf32>
    %cst_19 = arith.constant dense<0.000000e+00> : vector<8x256xf32>
    %36 = vector.multi_reduction <add>, %35, %cst_19 [0] : vector<1x8x256xf32> to vector<8x256xf32>
    %37 = arith.addf %34, %36 : vector<8x256xf32>
    %c0_20 = arith.constant 0 : index
    %c1_21 = arith.constant 1 : index
    %c0_22 = arith.constant 0 : index
    %c0_23 = arith.constant 0 : index
    %38 = vector.load %arg4[%c0_20, %c1_21, %c0_22, %c0_23] : memref<1x2x8x256xf32, #tpu.memory_space<vmem>>, vector<1x1x8x256xf32>
    %39 = vector.shape_cast %38 : vector<1x1x8x256xf32> to vector<8x256xf32>
    %40 = vector.shape_cast %37 : vector<8x256xf32> to vector<1x1x8x256xf32>
    tpu.vector_store %arg4[%c0_20, %c1_21, %c0_22, %c0_23], %40 {strides = array<i32>} : memref<1x2x8x256xf32, #tpu.memory_space<vmem>>, vector<1x1x8x256xf32>,
    return
  }
  func.func @transform_0(%arg0: i32, %arg1: i32) -> (i32, i32) {
    %c1_i32 = arith.constant 1 : i32
    %0 = arith.muli %arg0, %c1_i32 : i32
    %1 = arith.addi %0, %arg1 : i32
    %c0_i32 = arith.constant 0 : i32
    %c0_i32_0 = arith.constant 0 : i32
    return %1, %c0_i32 : i32, i32
  }
  func.func @transform_1(%arg0: i32, %arg1: i32) -> (i32, i32) {
    %c1_i32 = arith.constant 1 : i32
    %0 = arith.muli %arg0, %c1_i32 : i32
    %1 = arith.addi %0, %arg1 : i32
    %c0_i32 = arith.constant 0 : i32
    %c0_i32_0 = arith.constant 0 : i32
    return %1, %c0_i32 : i32, i32
  }
  func.func @transform_2(%arg0: i32, %arg1: i32) -> (i32, i32, i32, i32) {
    %c0_i32 = arith.constant 0 : i32
    %c0_i32_0 = arith.constant 0 : i32
    %c0_i32_1 = arith.constant 0 : i32
    %c0_i32_2 = arith.constant 0 : i32
    return %arg0, %c0_i32, %c0_i32_0, %c0_i32_1 : i32, i32, i32, i32
  }
}

</mosaic_0001>

<bundles_post_ra>
// kernel: tpu_custom_call.1
= control target key start
LH: loop header
LB: loop body
LE: loop exit
PB: predicated region body
PF: predicated region fallthrough
CT: control target
= control target key end

     0   :  { %7 = vsyncpa [#allocation3], 0  ;;  %s241_s0 = inlined_call_operand.hbm [shape: f32[8,256], index: 0, kind: input, shape index: {}]   ;;  %s242_s1 = inlined_call_operand.hbm [shape: f32[8,256], index: 1, kind: input, shape index: {}]   ;;  %s243_s2 = inlined_call_operand.hbm [shape: f32[1,2,8,256], index: 2, kind: output, shape index: {}]  }
   0x1   :  { %8 = vsyncpa [#allocation6], 0 }
   0x2   :  { %9 = vsyncpa [#allocation4], 0  ;;  %s205_s9 = smov [#allocation2]   ;;  %s206_s11 = smov [#allocation5]  }
   0x3   :  { %s20_s10 = sshll.u32 %s205_s9, 4  ;;  %s34_s12 = sshll.u32 %s206_s11, 4  ;;  %s21_s10 = int_to_ptr.vmem [resolvable:$true] %s20_s10  ;;  %s35_s12 = int_to_ptr.vmem [resolvable:$true] %s34_s12 }
   0x4   :  { %s147_s13 = scalar_lea.vmem %s21_s10, 256  ;;  %p152_p1 = scmp.lt.s32.totalorder %s21_s10, %s21_s10 }
   0x5   :  { %p148_p0 = scmp.ne.s32.totalorder %s21_s10, %s147_s13  ;;  %p153_p2 = scmp.lt.s32.totalorder %s147_s13, %s147_s13 }
   0x7   :  { %p154_p3 = por %p153_p2, %p152_p1 }
   0x9   :  { %p155_p4 = pnand %p154_p3, %p148_p0 }
   0xb   :  { %158 = shalt.err (!%p155_p4)
}
   0xc   :  { %23 = dma.hbm_to_vmem [thread:$0]  %s241_s0, 256, %s21_s10, [#allocation3]  }
   0xd   :  { %s167_s16 = scalar_lea.vmem %s35_s12, 256  ;;  %p172_p6 = scmp.lt.s32.totalorder %s35_s12, %s35_s12 }
   0xe   :  { %p168_p5 = scmp.ne.s32.totalorder %s35_s12, %s167_s16  ;;  %p173_p7 = scmp.lt.s32.totalorder %s167_s16, %s167_s16 }
  0x10   :  { %p174_p8 = por %p173_p7, %p172_p6 }
  0x12   :  { %p175_p9 = pnand %p174_p8, %p168_p5 }
  0x14   :  { %178 = shalt.err (!%p175_p9)
}
  0x15   :  { %37 = dma.hbm_to_vmem [thread:$0]  %s242_s1, 256, %s35_s12, [#allocation6]  }
  0x16   :  { %199 = dma.done.wait [#allocation3], 256  }
  0x17   :  { %200 = vsyncadd [#allocation3], 4294967040 }
  0x18   :  { %201 = dma.done.wait [#allocation6], 256  }
  0x19   :  { %202 = vsyncadd [#allocation6], 4294967040  ;;  %v54_v0 = vld [vmem:[#allocation2] sm:$0xff]  ;;  %v56_v1 = vld [vmem:[#allocation5] sm:$0xff]  ;;  %v207_v7 = vmov 0.0   ;;  %s208_s0 = smov [#allocation7]  }
  0x1a   :  { %v55_v2 = vld [vmem:[#allocation2 + $0x8] sm:$0xff]  ;;  %vm58_vm0 = vcmp.eq.f32.partialorder %v56_v1, 1.0  ;;  %v60_v3 = vsub.f32 1.0, %v54_v0  ;;  %v57_v4 = vld [vmem:[#allocation5 + $0x8] sm:$0xff]  ;;  %v72_v11 = vsub.f32 1.0, %v56_v1  ;;  %v78_v17 = vmul.f32 %v54_v0, %v54_v0  ;;  %s114_s1 = sshll.u32 %s208_s0, 4  ;;  %s115_s1 = int_to_ptr.vmem [resolvable:$true] %s114_s1 }
  0x1b   :  { %vm59_vm1 = vcmp.eq.f32.partialorder %v57_v4, 1.0  ;;  %v61_v5 = vsub.f32 1.0, %v55_v2  ;;  %v127_v8 = vsel %vm58_vm0, 1.0, %v207_v7  ;;  %v73_v12 = vsub.f32 1.0, %v57_v4  ;;  %s179_s19 = scalar_lea.vmem %s115_s1, 512  ;;  %p184_p11 = scmp.lt.s32.totalorder %s115_s1, %s115_s1 }
  0x1c   :  { %v62_v6 = vsel %vm58_vm0, %v54_v0, %v60_v3  ;;  %v128_v9 = vsel %vm59_vm1, 1.0, %v207_v7  ;;  %107 = vst [vmem:[#allocation7 + $0x10] sm:$0xff] %v127_v8  ;;  %v74_v13 = vmax.f32 %v72_v11, 0.0  ;;  %v79_v19 = vmul.f32 %v55_v2, %v55_v2  ;;  %p180_p10 = scmp.ne.s32.totalorder %s115_s1, %s179_s19  ;;  %p185_p12 = scmp.lt.s32.totalorder %s179_s19, %s179_s19 }
  0x1d   :  { %135 = vlog2.f32 %v62_v6  ;;  %v63_v10 = vsel %vm59_vm1, %v55_v2, %v61_v5  ;;  %108 = vst [vmem:[#allocation7 + $0x18] sm:$0xff] %v128_v9  ;;  %v75_v14 = vmax.f32 %v73_v12, 0.0 }
  0x1e   :  { %137 = vlog2.f32 %v63_v10  ;;  %v76_v15 = vmul.f32 %v74_v13, %v74_v13  ;;  %p186_p13 = por %p185_p12, %p184_p11 }
  0x1f   :  { %v77_v16 = vmul.f32 %v75_v14, %v75_v14 }
  0x20   :  { %v82_v22 = vmul.f32 %v76_v15, %v76_v15  ;;  %p187_p0 = pnand %p186_p13, %p180_p10 }
  0x21   :  { %v83_v24 = vmul.f32 %v77_v16, %v77_v16 }
  0x2a   :  { %v136_v18 = vpop.eup %135 }
  0x2b   :  { %v138_v20 = vpop.eup %137  ;;  %v65_v21 = vmul.f32 0.6931472, %v136_v18 }
  0x2c   :  { %v67_v23 = vmul.f32 0.6931472, %v138_v20 }
  0x2d   :  { %v68_v25 = vmul.f32 %v65_v21, %v60_v3  ;;  %v80_v26 = vmul.f32 %v78_v17, %v65_v21 }
  0x2e   :  { %v69_v27 = vmul.f32 %v67_v23, %v61_v5  ;;  %v81_v28 = vmul.f32 %v79_v19, %v67_v23 }
  0x2f   :  { %v70_v29 = vmul.f32 %v68_v25, %v60_v3  ;;  %v84_v30 = vmul.f32 %v82_v22, %v80_v26 }
  0x30   :  { %v71_v31 = vmul.f32 %v69_v27, %v61_v5  ;;  %v85_v32 = vmul.f32 %v83_v24, %v81_v28 }
  0x31   :  { %v86_v33 = vsel %vm58_vm0, %v70_v29, %v84_v30 }
  0x32   :  { %v87_v34 = vsel %vm59_vm1, %v71_v31, %v85_v32  ;;  %98 = vst [vmem:[#allocation7] sm:$0xff] %v86_v33 }
  0x33   :  { %99 = vst [vmem:[#allocation7 + $0x8] sm:$0xff] %v87_v34 }
  0x34   :  { %190 = shalt.err (!%p187_p0)
}
  0x35   :  { %s209_s20 = smov 256   ;;  %s210_s21 = smov 16  }
  0x36   :  { %120 = dma.vmem_to_hbm [thread:$0]  %s115_s1, 512, %s243_s2, [#allocation4], %s209_s20, %s209_s20, %s210_s21  }
  0x37   :  { %203 = dma.done.wait [#allocation4], 512  }
  0x38   :  { %204 = vsyncadd [#allocation4], 4294966784 }
  0x39   :  { %124 = vsyncpa [#allocation3], 1 }
  0x3a   :  { %125 = vsyncpa [#allocation6], 1 }
  0x3b   :  { %126 = vsyncpa [#allocation4], 1 }

</bundles_post_ra>
